<compile_context>
chip_gen: v6e
topology: v6e:2x2x1
jax: 0.10.0
libtpu: 0.0.40
codegen_flags: <defaults>
</compile_context>

<pallas_src>
import functools

import jax
import jax.numpy as jnp
from jax.experimental import pallas as pl
from jax.experimental.pallas import tpu as pltpu


def _margin_loss_kernel(lengths_ref, labels_ref, out_ref, *,
                        m_pos, m_neg, alpha, total_rows, tile_rows,
                        steps_per_slice, needs_mask):
    p = pl.program_id(0)   # slice (parallel) index
    i = pl.program_id(1)   # reduction step within the slice

    @pl.when(i == 0)
    def _init():
        out_ref[...] = jnp.zeros_like(out_ref)

    lens = lengths_ref[...].astype(jnp.float32)
    labs = labels_ref[...].astype(jnp.float32)

    left = jnp.square(jnp.maximum(m_pos - lens, 0.0))
    right = jnp.square(jnp.maximum(lens - m_neg, 0.0))
    # labs*left + alpha*(1-labs)*right == labs*(left - alpha*right) + alpha*right
    loss = labs * (left - alpha * right) + alpha * right

    if needs_mask:
        # Zero rows past the real extent (ragged last tile / phantom steps).
        row0 = (p * steps_per_slice + i) * tile_rows
        rid = row0 + jax.lax.broadcasted_iota(jnp.int32, loss.shape, 0)
        loss = jnp.where(rid < total_rows, loss, 0.0)

    tr, tc = loss.shape
    # (tile_rows, C) -> (tile_rows//8, 8, C): split of the leading (sublane)
    # axis on an 8-row boundary, so the reduction over axis 0 is pure VPU adds.
    out_ref[0] += jnp.sum(loss.reshape(tr // 8, 8, tc), axis=0)


def _round_up(x, m):
    return ((x + m - 1) // m) * m


def margin_loss(lengths, labels, m_pos=0.9, m_neg=0.1, alpha=0.5,
                max_tile_bytes=1 << 20, num_slices=2):
    """Mean margin loss over all elements of `lengths`/`labels` (any float dtype)."""
    assert lengths.shape == labels.shape, "lengths/labels must match"
    n = int(lengths.size)
    assert n > 0

    # Lane-dense view when possible (row-major flatten/reshape is free).
    if n % 128 == 0:
        cols = 128
        view_len = lengths.reshape(n // 128, 128)
        view_lab = labels.reshape(n // 128, 128)
    else:
        cols = lengths.shape[-1] if lengths.ndim >= 2 else n
        view_len = lengths.reshape(-1, cols)
        view_lab = labels.reshape(-1, cols)
    rows = view_len.shape[0]

    # ~1 MiB per input buffer, sized in f32 bytes (in-kernel intermediates are
    # f32), rounded to a multiple of 8 sublanes and capped by the array extent.
    tile_rows = max(8, (max_tile_bytes // (cols * 4)) // 8 * 8)
    tile_rows = min(tile_rows, _round_up(rows, 8))

    nblocks = pl.cdiv(rows, tile_rows)
    n_slices = num_slices if nblocks >= 2 * num_slices else 1
    steps_per_slice = pl.cdiv(nblocks, n_slices)
    needs_mask = (n_slices * steps_per_slice * tile_rows != rows)

    def in_map(p, i):
        # Clamp so phantom steps from the parallel split never address an
        # out-of-range block; their contribution is zeroed by the row mask.
        return (jnp.minimum(p * steps_per_slice + i, nblocks - 1), 0)

    kernel = functools.partial(
        _margin_loss_kernel,
        m_pos=float(m_pos), m_neg=float(m_neg), alpha=float(alpha),
        total_rows=rows, tile_rows=tile_rows,
        steps_per_slice=steps_per_slice, needs_mask=needs_mask)

    partials = pl.pallas_call(
        kernel,
        out_shape=jax.ShapeDtypeStruct((n_slices, 8, cols), jnp.float32),
        grid=(n_slices, steps_per_slice),
        in_specs=[
            pl.BlockSpec((tile_rows, cols), in_map),
            pl.BlockSpec((tile_rows, cols), in_map),
        ],
        out_specs=pl.BlockSpec((1, 8, cols), lambda p, i: (p, 0, 0)),
        compiler_params=pltpu.CompilerParams(
            dimension_semantics=("parallel", "arbitrary"),
            vmem_limit_bytes=32 * 1024 * 1024),
    )(view_len, view_lab)

    # Tiny cross-lane/slice reduce + mean scale done once, outside the kernel.
    return jnp.sum(partials) * (1.0 / float(n))


def margin_loss_ref(lengths, labels, m_pos=0.9, m_neg=0.1, alpha=0.5):
    lengths = lengths.astype(jnp.float32)
    labels = labels.astype(jnp.float32)
    left = jnp.maximum(m_pos - lengths, 0.0) ** 2
    right = jnp.maximum(lengths - m_neg, 0.0) ** 2
    return jnp.mean(labels * left + alpha * (1.0 - labels) * right)


if __name__ == "__main__":
    key = jax.random.PRNGKey(0)
    k1, k2, k3, k4, k5, k6 = jax.random.split(key, 6)

    # 1) Small capsule-net shape: batch=8 length vectors over 128 classes
    #    (n divisible by 128 -> lane-dense fast path, single tile).
    B, C = 8, 128
    lengths = jax.random.uniform(k1, (B, C), dtype=jnp.float32)
    labels = jax.random.bernoulli(k2, p=0.1, shape=(B, C)).astype(jnp.float32)
    out = jax.block_until_ready(margin_loss(lengths, labels))
    ref = margin_loss_ref(lengths, labels)
    assert jnp.allclose(out, ref, rtol=1e-5, atol=1e-6), (out, ref)

    # 2) Ragged, non-128-divisible shape -> (rows, C) fallback view + row mask.
    B2, C2 = 13, 40
    lengths2 = jax.random.uniform(k3, (B2, C2), dtype=jnp.float32)
    labels2 = jax.random.bernoulli(k4, p=0.1, shape=(B2, C2)).astype(jnp.float32)
    out2 = jax.block_until_ready(margin_loss(lengths2, labels2))
    ref2 = margin_loss_ref(lengths2, labels2)
    assert jnp.allclose(out2, ref2, rtol=1e-5, atol=1e-6), (out2, ref2)

    # 3) bf16 inputs + tiny tiles to exercise multi-step grid, the 2-slice
    #    parallel split, phantom-step clamping and the in-kernel mask.
    B3, C3 = 40, 128
    lengths3 = jax.random.uniform(k5, (B3, C3), dtype=jnp.float32).astype(jnp.bfloat16)
    labels3 = jax.random.bernoulli(k6, p=0.1, shape=(B3, C3)).astype(jnp.bfloat16)
    out3 = jax.block_until_ready(
        margin_loss(lengths3, labels3, max_tile_bytes=8 * 128 * 4))
    ref3 = margin_loss_ref(lengths3, labels3)
    assert jnp.allclose(out3, ref3, rtol=1e-5, atol=1e-6), (out3, ref3)

    print("KERNEL_OK")
</pallas_src>

<mosaic_0001>
module attributes {stable_mosaic.version = 11 : i64} {
  func.func @_margin_loss_kernel(%arg0: i32, %arg1: i32, %arg2: memref<8x128xf32, #tpu.memory_space<vmem>>, %arg3: memref<8x128xf32, #tpu.memory_space<vmem>>, %arg4: memref<1x8x128xf32, #tpu.memory_space<vmem>>) attributes {dimension_semantics = [#tpu.dimension_semantics<parallel>, #tpu.dimension_semantics<arbitrary>], iteration_bounds = array<i64: 1, 1>, scalar_prefetch = 0 : i64, scratch_operands = 0 : i64, tpu.core_type = #tpu.core_type<tc>, window_params = [{transform_indices = @transform_0, window_bounds = array<i64: 8, 128>}, {transform_indices = @transform_1, window_bounds = array<i64: 8, 128>}, {transform_indices = @transform_2, window_bounds = array<i64: 1, 8, 128>}]} {
    %c0_i32 = arith.constant 0 : i32
    %0 = arith.cmpi eq, %arg1, %c0_i32 : i32
    %1 = arith.extui %0 : i1 to i32
    %c0_i32_0 = arith.constant 0 : i32
    %2 = arith.cmpi ne, %1, %c0_i32_0 : i32
    scf.if %2 {
      %cst_16 = arith.constant 0.000000e+00 : f32
      %30 = vector.broadcast %cst_16 : f32 to vector<1x8x128xf32>
      %c0_17 = arith.constant 0 : index
      %c0_18 = arith.constant 0 : index
      %c0_19 = arith.constant 0 : index
      %31 = vector.load %arg4[%c0_17, %c0_18, %c0_19] : memref<1x8x128xf32, #tpu.memory_space<vmem>>, vector<1x8x128xf32>
      tpu.vector_store %arg4[%c0_17, %c0_18, %c0_19], %30 {strides = array<i32>} : memref<1x8x128xf32, #tpu.memory_space<vmem>>, vector<1x8x128xf32>,
    } else {
    }
    %c0 = arith.constant 0 : index
    %c0_1 = arith.constant 0 : index
    %3 = vector.load %arg2[%c0, %c0_1] : memref<8x128xf32, #tpu.memory_space<vmem>>, vector<8x128xf32>
    %c0_2 = arith.constant 0 : index
    %c0_3 = arith.constant 0 : index
    %4 = vector.load %arg3[%c0_2, %c0_3] : memref<8x128xf32, #tpu.memory_space<vmem>>, vector<8x128xf32>
    %cst = arith.constant 0.899999976 : f32
    %5 = vector.broadcast %cst : f32 to vector<8x128xf32>
    %6 = arith.subf %5, %3 : vector<8x128xf32>
    %cst_4 = arith.constant 0.000000e+00 : f32
    %7 = vector.broadcast %cst_4 : f32 to vector<8x128xf32>
    %8 = arith.maximumf %6, %7 : vector<8x128xf32>
    %9 = arith.mulf %8, %8 : vector<8x128xf32>
    %cst_5 = arith.constant 1.000000e-01 : f32
    %10 = vector.broadcast %cst_5 : f32 to vector<8x128xf32>
    %11 = arith.subf %3, %10 : vector<8x128xf32>
    %cst_6 = arith.constant 0.000000e+00 : f32
    %12 = vector.broadcast %cst_6 : f32 to vector<8x128xf32>
    %13 = arith.maximumf %11, %12 : vector<8x128xf32>
    %14 = arith.mulf %13, %13 : vector<8x128xf32>
    %cst_7 = arith.constant 5.000000e-01 : f32
    %15 = vector.broadcast %cst_7 : f32 to vector<8x128xf32>
    %16 = arith.mulf %15, %14 : vector<8x128xf32>
    %17 = arith.subf %9, %16 : vector<8x128xf32>
    %18 = arith.mulf %4, %17 : vector<8x128xf32>
    %cst_8 = arith.constant 5.000000e-01 : f32
    %19 = vector.broadcast %cst_8 : f32 to vector<8x128xf32>
    %20 = arith.mulf %19, %14 : vector<8x128xf32>
    %21 = arith.addf %18, %20 : vector<8x128xf32>
    %c0_9 = arith.constant 0 : index
    %c0_10 = arith.constant 0 : index
    %c0_11 = arith.constant 0 : index
    %22 = vector.load %arg4[%c0_9, %c0_10, %c0_11] : memref<1x8x128xf32, #tpu.memory_space<vmem>>, vector<1x8x128xf32>
    %23 = vector.shape_cast %22 : vector<1x8x128xf32> to vector<8x128xf32>
    %24 = vector.shape_cast %21 : vector<8x128xf32> to vector<1x8x128xf32>
    %cst_12 = arith.constant dense<0.000000e+00> : vector<8x128xf32>
    %25 = vector.multi_reduction <add>, %24, %cst_12 [0] : vector<1x8x128xf32> to vector<8x128xf32>
    %26 = arith.addf %23, %25 : vector<8x128xf32>
    %c0_13 = arith.constant 0 : index
    %c0_14 = arith.constant 0 : index
    %c0_15 = arith.constant 0 : index
    %27 = vector.load %arg4[%c0_13, %c0_14, %c0_15] : memref<1x8x128xf32, #tpu.memory_space<vmem>>, vector<1x8x128xf32>
    %28 = vector.shape_cast %27 : vector<1x8x128xf32> to vector<8x128xf32>
    %29 = vector.shape_cast %26 : vector<8x128xf32> to vector<1x8x128xf32>
    tpu.vector_store %arg4[%c0_13, %c0_14, %c0_15], %29 {strides = array<i32>} : memref<1x8x128xf32, #tpu.memory_space<vmem>>, vector<1x8x128xf32>,
    return
  }
  func.func @transform_0(%arg0: i32, %arg1: i32) -> (i32, i32) {
    %c1_i32 = arith.constant 1 : i32
    %0 = arith.muli %arg0, %c1_i32 : i32
    %1 = arith.addi %0, %arg1 : i32
    %c0_i32 = arith.constant 0 : i32
    %2 = arith.minsi %1, %c0_i32 : i32
    %c0_i32_0 = arith.constant 0 : i32
    %c0_i32_1 = arith.constant 0 : i32
    return %2, %c0_i32_0 : i32, i32
  }
  func.func @transform_1(%arg0: i32, %arg1: i32) -> (i32, i32) {
    %c1_i32 = arith.constant 1 : i32
    %0 = arith.muli %arg0, %c1_i32 : i32
    %1 = arith.addi %0, %arg1 : i32
    %c0_i32 = arith.constant 0 : i32
    %2 = arith.minsi %1, %c0_i32 : i32
    %c0_i32_0 = arith.constant 0 : i32
    %c0_i32_1 = arith.constant 0 : i32
    return %2, %c0_i32_0 : i32, i32
  }
  func.func @transform_2(%arg0: i32, %arg1: i32) -> (i32, i32, i32) {
    %c0_i32 = arith.constant 0 : i32
    %c0_i32_0 = arith.constant 0 : i32
    %c0_i32_1 = arith.constant 0 : i32
    return %arg0, %c0_i32, %c0_i32_0 : i32, i32, i32
  }
}

</mosaic_0001>

<bundles_post_ra>
// kernel: tpu_custom_call.1
= control target key start
LH: loop header
LB: loop body
LE: loop exit
PB: predicated region body
PF: predicated region fallthrough
CT: control target
= control target key end

     0   :  { %7 = vsyncpa [#allocation3], 0  ;;  %s191_s0 = inlined_call_operand.hbm [shape: f32[8,128], index: 0, kind: input, shape index: {}]   ;;  %s192_s1 = inlined_call_operand.hbm [shape: f32[8,128], index: 1, kind: input, shape index: {}]   ;;  %s193_s2 = inlined_call_operand.hbm [shape: f32[1,8,128], index: 2, kind: output, shape index: {}]  }
   0x1   :  { %8 = vsyncpa [#allocation6], 0 }
   0x2   :  { %9 = vsyncpa [#allocation4], 0  ;;  %s164_s9 = smov [#allocation2]   ;;  %s165_s11 = smov [#allocation5]  }
   0x3   :  { %s21_s10 = sshll.u32 %s164_s9, 4  ;;  %s36_s12 = sshll.u32 %s165_s11, 4  ;;  %s22_s10 = int_to_ptr.vmem [resolvable:$true] %s21_s10  ;;  %s37_s12 = int_to_ptr.vmem [resolvable:$true] %s36_s12 }
   0x4   :  { %s106_s13 = scalar_lea.vmem %s22_s10, 128  ;;  %p111_p1 = scmp.lt.s32.totalorder %s22_s10, %s22_s10 }
   0x5   :  { %p107_p0 = scmp.ne.s32.totalorder %s22_s10, %s106_s13  ;;  %p112_p2 = scmp.lt.s32.totalorder %s106_s13, %s106_s13 }
   0x7   :  { %p113_p3 = por %p112_p2, %p111_p1 }
   0x9   :  { %p114_p4 = pnand %p113_p3, %p107_p0 }
   0xb   :  { %117 = shalt.err (!%p114_p4)
}
   0xc   :  { %24 = dma.hbm_to_vmem [thread:$0]  %s191_s0, 128, %s22_s10, [#allocation3]  }
   0xd   :  { %s126_s16 = scalar_lea.vmem %s37_s12, 128  ;;  %p131_p6 = scmp.lt.s32.totalorder %s37_s12, %s37_s12 }
   0xe   :  { %p127_p5 = scmp.ne.s32.totalorder %s37_s12, %s126_s16  ;;  %p132_p7 = scmp.lt.s32.totalorder %s126_s16, %s126_s16 }
  0x10   :  { %p133_p8 = por %p132_p7, %p131_p6 }
  0x12   :  { %p134_p9 = pnand %p133_p8, %p127_p5 }
  0x14   :  { %137 = shalt.err (!%p134_p9)
}
  0x15   :  { %39 = dma.hbm_to_vmem [thread:$0]  %s192_s1, 128, %s37_s12, [#allocation6]  }
  0x16   :  { %158 = dma.done.wait [#allocation3], 128  }
  0x17   :  { %159 = vsyncadd [#allocation3], 4294967168 }
  0x18   :  { %160 = dma.done.wait [#allocation6], 128  }
  0x19   :  { %161 = vsyncadd [#allocation6], 4294967168  ;;  %v57_v0 = vld [vmem:[#allocation2] sm:$0xff]  ;;  %v58_v8 = vld [vmem:[#allocation5] sm:$0xff]  ;;  %s166_s0 = smov [#allocation7]  }
  0x1a   :  { %v59_v1 = vsub.f32 0.9, %v57_v0  ;;  %v93_v2 = vadd.f32 -0.1, %v57_v0  ;;  %s79_s19 = sshll.u32 %s166_s0, 4  ;;  %s80_s19 = int_to_ptr.vmem [resolvable:$true] %s79_s19 }
  0x1b   :  { %s138_s1 = scalar_lea.vmem %s80_s19, 128  ;;  %p143_p11 = scmp.lt.s32.totalorder %s80_s19, %s80_s19 }
  0x1c   :  { %v60_v3 = vmax.f32 %v59_v1, 0.0  ;;  %v63_v4 = vmax.f32 %v93_v2, 0.0  ;;  %p139_p10 = scmp.ne.s32.totalorder %s80_s19, %s138_s1  ;;  %p144_p12 = scmp.lt.s32.totalorder %s138_s1, %s138_s1 }
  0x1e   :  { %v61_v5 = vmul.f32 %v60_v3, %v60_v3  ;;  %v64_v6 = vmul.f32 %v63_v4, %v63_v4  ;;  %p145_p13 = por %p144_p12, %p143_p11 }
  0x20   :  { %v65_v7 = vmul.f32 0.5, %v64_v6  ;;  %p146_p0 = pnand %p145_p13, %p139_p10 }
  0x22   :  { %v66_v9 = vsub.f32 %v61_v5, %v65_v7 }
  0x24   :  { %v67_v10 = vmul.f32 %v66_v9, %v58_v8 }
  0x26   :  { %v68_v11 = vadd.f32 %v67_v10, %v65_v7 }
  0x28   :  { %72 = vst [vmem:[#allocation7] sm:$0xff] %v68_v11 }
  0x29   :  { %149 = shalt.err (!%p146_p0)
}
  0x2a   :  { %82 = dma.vmem_to_hbm [thread:$0]  %s80_s19, 128, %s193_s2, [#allocation4]  }
  0x2b   :  { %162 = dma.done.wait [#allocation4], 128  }
  0x2c   :  { %163 = vsyncadd [#allocation4], 4294967168 }
  0x2d   :  { %86 = vsyncpa [#allocation3], 1 }
  0x2e   :  { %87 = vsyncpa [#allocation6], 1 }
  0x2f   :  { %88 = vsyncpa [#allocation4], 1 }

</bundles_post_ra>
